<compile_context>
chip_gen: v7x
topology: tpu7x:2x2x1
jax: 0.10.0
libtpu: 0.0.40
codegen_flags: <defaults>
</compile_context>

<pallas_src>
import numpy as np

import jax
import jax.numpy as jnp
from jax import lax
from jax.experimental import pallas as pl
from jax.experimental.pallas import tpu as pltpu

TEMPERATURE = 0.07
DIAG_FILL = -10.0


# ---------------------------------------------------------------------------
# Static-shape helpers (wrapper side)
# ---------------------------------------------------------------------------
def _choose_groups_per_step(batch_size, npatches, dim, itemsize,
                            vmem_budget_bytes=24 << 20):
    """Number of image groups fused per grid step.

    Prefer the SMALLEST divisor G of batch_size with (G * npatches) % 128 == 0
    (lane-dense output row) — smallest keeps the grid as long as possible so
    dimension_semantics=("parallel",) can load-balance v7x's two TensorCores —
    subject to the double-buffered q/k input blocks fitting a conservative
    VMEM budget. Falls back to the largest fitting divisor otherwise."""
    def fits(g):
        rows = g * npatches
        block_ok = (rows % 8 == 0) or (g == batch_size)
        in_bytes = 2 * 2 * rows * dim * itemsize          # 2 inputs x double buffer
        out_bytes = 2 * rows * 4                          # f32 loss row, double buffer
        return block_ok and (in_bytes + out_bytes) <= vmem_budget_bytes

    candidates = [g for g in range(1, batch_size + 1)
                  if batch_size % g == 0 and fits(g)]
    if not candidates:
        return 1
    for g in candidates:
        if (g * npatches) % 128 == 0:
            return g
    return candidates[-1]


def _choose_neg_chunk(npatches, max_chunk=256):
    """Sublane chunk size for the negatives axis (flash-style online pass).

    Single chunk for small patch counts; bounded chunks at production sizes so
    the (chunk, P) temporaries stay in vregs instead of spilling."""
    if npatches <= max_chunk:
        return npatches
    for c in range(max_chunk, 7, -8):
        if npatches % c == 0:
            return c
    return npatches


# ---------------------------------------------------------------------------
# Kernel factory: one grid step handles `groups` image groups of `npatches`
# queries/keys each, storing one lane-dense (1, groups*npatches) loss row.
# ---------------------------------------------------------------------------
def _make_patch_nce_kernel(npatches, groups, neg_chunk, temperature, diag_fill):
    P = int(npatches)
    G = int(groups)
    C = int(neg_chunk)
    assert P % C == 0
    n_chunks = P // C
    inv_t = float(1.0 / temperature)
    fill = float(diag_fill / temperature)   # diagonal is filled *before* /T in torch

    def kernel(q_ref, k_ref, loss_ref):
        mm_dtype = q_ref.dtype
        # f32 inputs: exact multi-pass MXU; sub-32-bit inputs: native fast path.
        prec = (lax.Precision.HIGHEST if mm_dtype == jnp.float32
                else lax.Precision.DEFAULT)

        # Query index along lanes; key index per chunk along sublanes.
        # Hoisted out of the group loop (broadcasts are not CSE'd in loops).
        col = lax.broadcasted_iota(jnp.int32, (1, P), 1)
        diag_chunks = [
            (lax.broadcasted_iota(jnp.int32, (C, 1), 0) + c * C) == col
            for c in range(n_chunks)
        ]

        for g in range(G):                       # static unroll over fused image groups
            base = g * P
            # Temperature folded into q once per group: one (P, D) multiply,
            # kept in the MXU operand dtype.
            q = q_ref[base:base + P, :]
            qs = (q.astype(jnp.float32) * inv_t).astype(mm_dtype)        # (P, D)

            m = None        # (1, P) running max over negatives
            s = None        # (1, P) running sum of exp(neg - m)
            l_pos = None    # (1, P) positive logit (Gram diagonal)
            for c in range(n_chunks):            # flash-style online reduction
                kc = k_ref[base + c * C: base + (c + 1) * C, :]          # (C, D)
                # s_t[j, i] = <k_j, q_i / T>: negatives on sublanes, queries on lanes
                s_t = lax.dot_general(kc, qs, (((1,), (1,)), ((), ())),
                                      preferred_element_type=jnp.float32,
                                      precision=prec)                    # (C, P) f32
                diag = diag_chunks[c]
                pos_c = jnp.sum(jnp.where(diag, s_t, 0.0), axis=0, keepdims=True)
                l_pos = pos_c if l_pos is None else l_pos + pos_c
                neg = jnp.where(diag, fill, s_t)                         # (C, P)
                m_c = jnp.max(neg, axis=0, keepdims=True)                # (1, P)
                s_c = jnp.sum(jnp.exp(neg - m_c), axis=0, keepdims=True)
                if m is None:
                    m, s = m_c, s_c
                else:
                    m_new = jnp.maximum(m, m_c)
                    s = s * jnp.exp(m - m_new) + s_c * jnp.exp(m_c - m_new)
                    m = m_new

            # Cross-entropy with target class 0 over [l_pos, l_neg...]:
            #   loss = logsumexp([l_pos, l_neg...]) - l_pos   (stable form)
            m_all = jnp.maximum(m, l_pos)
            sum_exp = s * jnp.exp(m - m_all) + jnp.exp(l_pos - m_all)
            loss_ref[:, base:base + P] = m_all + jnp.log(sum_exp) - l_pos

    return kernel


# ---------------------------------------------------------------------------
# Wrapper
# ---------------------------------------------------------------------------
def patch_nce_loss(feat_q, feat_k, batch_size):
    """Per-row PatchNCE loss (CrossEntropyLoss(reduction='none'), target 0)."""
    total, dim = feat_q.shape
    assert total % batch_size == 0, "feat rows must be batch_size * npatches"
    npatches = total // batch_size

    groups = _choose_groups_per_step(batch_size, npatches, dim,
                                     feat_q.dtype.itemsize)
    batch_groups = batch_size // groups
    rows = groups * npatches
    neg_chunk = _choose_neg_chunk(npatches)

    kernel = _make_patch_nce_kernel(npatches, groups, neg_chunk,
                                    TEMPERATURE, DIAG_FILL)

    grid_spec = pltpu.PrefetchScalarGridSpec(
        num_scalar_prefetch=0,
        grid=(batch_groups,),
        in_specs=[
            pl.BlockSpec((rows, dim), lambda b: (b, 0)),
            pl.BlockSpec((rows, dim), lambda b: (b, 0)),
        ],
        out_specs=pl.BlockSpec((1, rows), lambda b: (b, 0)),
    )
    per_query = pl.pallas_call(
        kernel,
        out_shape=jax.ShapeDtypeStruct((batch_groups, rows), jnp.float32),
        grid_spec=grid_spec,
        compiler_params=pltpu.CompilerParams(
            dimension_semantics=("parallel",)),
    )(feat_q, feat_k)           # native dtype in; no wrapper-side casts
    # (batch_groups, G*P) row-major == PyTorch's flattened (b*npatches + i) order.
    return per_query.reshape(-1)


# ---------------------------------------------------------------------------
# Pure-JAX reference mirroring the PyTorch module, for validation.
# ---------------------------------------------------------------------------
def patch_nce_loss_reference(feat_q, feat_k, batch_size):
    feat_q = feat_q.astype(jnp.float32)
    feat_k = feat_k.astype(jnp.float32)
    total, dim = feat_q.shape
    npatches = total // batch_size
    hp = lax.Precision.HIGHEST

    l_pos = jnp.sum(feat_q * feat_k, axis=1, keepdims=True)                # (total, 1)
    q = feat_q.reshape(batch_size, npatches, dim)
    k = feat_k.reshape(batch_size, npatches, dim)
    l_neg = jnp.einsum('bpd,bqd->bpq', q, k, precision=hp)                 # (bs, P, P)
    diag = jnp.eye(npatches, dtype=bool)[None, :, :]
    l_neg = jnp.where(diag, DIAG_FILL, l_neg).reshape(total, npatches)
    out = jnp.concatenate([l_pos, l_neg], axis=1) / TEMPERATURE
    m = jnp.max(out, axis=1, keepdims=True)
    lse = m[:, 0] + jnp.log(jnp.sum(jnp.exp(out - m), axis=1))
    return lse - out[:, 0]


if __name__ == "__main__":
    key = jax.random.PRNGKey(0)
    kq, kk = jax.random.split(key)

    BATCH = 2     # constructor batch_size (number of images)
    NPATCH = 64   # patches sampled per image
    DIM = 32      # feature dimension

    feat_q = jax.random.normal(kq, (BATCH * NPATCH, DIM), dtype=jnp.float32)
    feat_k = jax.random.normal(kk, (BATCH * NPATCH, DIM), dtype=jnp.float32)
    # PatchNCE features are L2-normalized upstream in the model; match that so
    # the temperature-scaled logits are in a realistic range.
    feat_q = feat_q / jnp.linalg.norm(feat_q, axis=1, keepdims=True)
    feat_k = feat_k / jnp.linalg.norm(feat_k, axis=1, keepdims=True)

    run = jax.jit(lambda a, b: patch_nce_loss(a, b, BATCH))

    # f32 inputs: exact-precision MXU path, tight tolerance.
    loss_f32 = jax.block_until_ready(run(feat_q, feat_k))
    ref_f32 = np.asarray(jax.block_until_ready(
        patch_nce_loss_reference(feat_q, feat_k, BATCH)))
    np.testing.assert_allclose(np.asarray(loss_f32), ref_f32, rtol=1e-4, atol=1e-4)

    # bf16 inputs (native upstream dtype): bf16 operands feed the MXU directly
    # with f32 accumulation; compared at bf16-class tolerance since the
    # temperature fold rounds the bf16 operand once (review: accepted).
    q16, k16 = feat_q.astype(jnp.bfloat16), feat_k.astype(jnp.bfloat16)
    loss_bf16 = jax.block_until_ready(run(q16, k16))
    ref_bf16 = np.asarray(jax.block_until_ready(
        patch_nce_loss_reference(q16, k16, BATCH)))
    np.testing.assert_allclose(np.asarray(loss_bf16), ref_bf16, rtol=2e-2, atol=1e-1)

    print("KERNEL_OK")
</pallas_src>

<mosaic_0001>
module attributes {stable_mosaic.version = 11 : i64} {
  func.func @kernel(%arg0: i32, %arg1: memref<128x32xf32, #tpu.memory_space<vmem>>, %arg2: memref<128x32xf32, #tpu.memory_space<vmem>>, %arg3: memref<1x128xf32, #tpu.memory_space<vmem>>) attributes {dimension_semantics = [#tpu.dimension_semantics<parallel>], iteration_bounds = array<i64: 1>, scalar_prefetch = 0 : i64, scratch_operands = 0 : i64, tpu.core_type = #tpu.core_type<tc>, window_params = [{transform_indices = @transform_0, window_bounds = array<i64: 128, 32>}, {transform_indices = @transform_1, window_bounds = array<i64: 128, 32>}, {transform_indices = @transform_2, window_bounds = array<i64: 1, 128>}]} {
    %0 = tpu.iota {dimensions = array<i32: 1>} : vector<1x64xi32>
    %1 = tpu.iota {dimensions = array<i32: 0>} : vector<64x1xi32>
    %c0_i32 = arith.constant 0 : i32
    %2 = vector.broadcast %c0_i32 : i32 to vector<64x1xi32>
    %3 = arith.addi %1, %2 : vector<64x1xi32>
    %4 = vector.broadcast %3 : vector<64x1xi32> to vector<64x64xi32>
    %5 = vector.broadcast %0 : vector<1x64xi32> to vector<64x64xi32>
    %6 = arith.cmpi eq, %4, %5 : vector<64x64xi32>
    %c0 = arith.constant 0 : index
    %c0_0 = arith.constant 0 : index
    %7 = vector.load %arg1[%c0, %c0_0] : memref<128x32xf32, #tpu.memory_space<vmem>>, vector<64x32xf32>
    %cst = arith.constant 14.2857141 : f32
    %8 = vector.broadcast %cst : f32 to vector<64x32xf32>
    %9 = arith.mulf %7, %8 : vector<64x32xf32>
    %c0_1 = arith.constant 0 : index
    %c0_2 = arith.constant 0 : index
    %10 = vector.load %arg2[%c0_1, %c0_2] : memref<128x32xf32, #tpu.memory_space<vmem>>, vector<64x32xf32>
    %cst_3 = arith.constant dense<0.000000e+00> : vector<64x64xf32>
    %11 = tpu.matmul %10, %9, %cst_3 {dimension_numbers = #tpu.dot_dimension_numbers<[1], [1], [0], [0], [0, 0, 1, 0], [], []>, precision = #tpu.contract_precision<fp32>} : vector<64x32xf32>, vector<64x32xf32>, vector<64x64xf32> -> vector<64x64xf32>
    %cst_4 = arith.constant 0.000000e+00 : f32
    %12 = vector.broadcast %cst_4 : f32 to vector<64x64xf32>
    %13 = arith.select %6, %11, %12 : vector<64x64xi1>, vector<64x64xf32>
    %cst_5 = arith.constant dense<0.000000e+00> : vector<64xf32>
    %14 = vector.multi_reduction <add>, %13, %cst_5 [0] : vector<64x64xf32> to vector<64xf32>
    %15 = vector.shape_cast %14 : vector<64xf32> to vector<1x64xf32>
    %cst_6 = arith.constant -142.857147 : f32
    %16 = vector.broadcast %cst_6 : f32 to vector<64x64xf32>
    %17 = arith.select %6, %16, %11 : vector<64x64xi1>, vector<64x64xf32>
    %cst_7 = arith.constant dense<0xFF800000> : vector<64xf32>
    %18 = vector.multi_reduction <maximumf>, %17, %cst_7 [0] : vector<64x64xf32> to vector<64xf32>
    %19 = vector.shape_cast %18 : vector<64xf32> to vector<1x64xf32>
    %20 = vector.broadcast %19 : vector<1x64xf32> to vector<64x64xf32>
    %21 = arith.subf %17, %20 : vector<64x64xf32>
    %22 = math.exp %21 : vector<64x64xf32>
    %cst_8 = arith.constant dense<0.000000e+00> : vector<64xf32>
    %23 = vector.multi_reduction <add>, %22, %cst_8 [0] : vector<64x64xf32> to vector<64xf32>
    %24 = vector.shape_cast %23 : vector<64xf32> to vector<1x64xf32>
    %25 = arith.maximumf %19, %15 : vector<1x64xf32>
    %26 = arith.subf %19, %25 : vector<1x64xf32>
    %27 = math.exp %26 : vector<1x64xf32>
    %28 = arith.mulf %24, %27 : vector<1x64xf32>
    %29 = arith.subf %15, %25 : vector<1x64xf32>
    %30 = math.exp %29 : vector<1x64xf32>
    %31 = arith.addf %28, %30 : vector<1x64xf32>
    %32 = math.log %31 : vector<1x64xf32>
    %33 = arith.addf %25, %32 : vector<1x64xf32>
    %34 = arith.subf %33, %15 : vector<1x64xf32>
    %c0_9 = arith.constant 0 : index
    %c0_10 = arith.constant 0 : index
    %35 = vector.load %arg3[%c0_9, %c0_10] : memref<1x128xf32, #tpu.memory_space<vmem>>, vector<1x64xf32>
    tpu.vector_store %arg3[%c0_9, %c0_10], %34 {strides = array<i32>} : memref<1x128xf32, #tpu.memory_space<vmem>>, vector<1x64xf32>,
    %c64 = arith.constant 64 : index
    %c0_11 = arith.constant 0 : index
    %36 = vector.load %arg1[%c64, %c0_11] : memref<128x32xf32, #tpu.memory_space<vmem>>, vector<64x32xf32>
    %cst_12 = arith.constant 14.2857141 : f32
    %37 = vector.broadcast %cst_12 : f32 to vector<64x32xf32>
    %38 = arith.mulf %36, %37 : vector<64x32xf32>
    %c64_13 = arith.constant 64 : index
    %c0_14 = arith.constant 0 : index
    %39 = vector.load %arg2[%c64_13, %c0_14] : memref<128x32xf32, #tpu.memory_space<vmem>>, vector<64x32xf32>
    %cst_15 = arith.constant dense<0.000000e+00> : vector<64x64xf32>
    %40 = tpu.matmul %39, %38, %cst_15 {dimension_numbers = #tpu.dot_dimension_numbers<[1], [1], [0], [0], [0, 0, 1, 0], [], []>, precision = #tpu.contract_precision<fp32>} : vector<64x32xf32>, vector<64x32xf32>, vector<64x64xf32> -> vector<64x64xf32>
    %cst_16 = arith.constant 0.000000e+00 : f32
    %41 = vector.broadcast %cst_16 : f32 to vector<64x64xf32>
    %42 = arith.select %6, %40, %41 : vector<64x64xi1>, vector<64x64xf32>
    %cst_17 = arith.constant dense<0.000000e+00> : vector<64xf32>
    %43 = vector.multi_reduction <add>, %42, %cst_17 [0] : vector<64x64xf32> to vector<64xf32>
    %44 = vector.shape_cast %43 : vector<64xf32> to vector<1x64xf32>
    %cst_18 = arith.constant -142.857147 : f32
    %45 = vector.broadcast %cst_18 : f32 to vector<64x64xf32>
    %46 = arith.select %6, %45, %40 : vector<64x64xi1>, vector<64x64xf32>
    %cst_19 = arith.constant dense<0xFF800000> : vector<64xf32>
    %47 = vector.multi_reduction <maximumf>, %46, %cst_19 [0] : vector<64x64xf32> to vector<64xf32>
    %48 = vector.shape_cast %47 : vector<64xf32> to vector<1x64xf32>
    %49 = vector.broadcast %48 : vector<1x64xf32> to vector<64x64xf32>
    %50 = arith.subf %46, %49 : vector<64x64xf32>
    %51 = math.exp %50 : vector<64x64xf32>
    %cst_20 = arith.constant dense<0.000000e+00> : vector<64xf32>
    %52 = vector.multi_reduction <add>, %51, %cst_20 [0] : vector<64x64xf32> to vector<64xf32>
    %53 = vector.shape_cast %52 : vector<64xf32> to vector<1x64xf32>
    %54 = arith.maximumf %48, %44 : vector<1x64xf32>
    %55 = arith.subf %48, %54 : vector<1x64xf32>
    %56 = math.exp %55 : vector<1x64xf32>
    %57 = arith.mulf %53, %56 : vector<1x64xf32>
    %58 = arith.subf %44, %54 : vector<1x64xf32>
    %59 = math.exp %58 : vector<1x64xf32>
    %60 = arith.addf %57, %59 : vector<1x64xf32>
    %61 = math.log %60 : vector<1x64xf32>
    %62 = arith.addf %54, %61 : vector<1x64xf32>
    %63 = arith.subf %62, %44 : vector<1x64xf32>
    %c0_21 = arith.constant 0 : index
    %c64_22 = arith.constant 64 : index
    %64 = vector.load %arg3[%c0_21, %c64_22] : memref<1x128xf32, #tpu.memory_space<vmem>>, vector<1x64xf32>
    tpu.vector_store %arg3[%c0_21, %c64_22], %63 {strides = array<i32>} : memref<1x128xf32, #tpu.memory_space<vmem>>, vector<1x64xf32>,
    return
  }
  func.func @transform_0(%arg0: i32) -> (i32, i32) {
    %c0_i32 = arith.constant 0 : i32
    %c0_i32_0 = arith.constant 0 : i32
    return %arg0, %c0_i32 : i32, i32
  }
  func.func @transform_1(%arg0: i32) -> (i32, i32) {
    %c0_i32 = arith.constant 0 : i32
    %c0_i32_0 = arith.constant 0 : i32
    return %arg0, %c0_i32 : i32, i32
  }
  func.func @transform_2(%arg0: i32) -> (i32, i32) {
    %c0_i32 = arith.constant 0 : i32
    %c0_i32_0 = arith.constant 0 : i32
    return %arg0, %c0_i32 : i32, i32
  }
}

</mosaic_0001>

<bundles_post_ra>
// kernel: _lambda_.1
= control target key start
LH: loop header
LB: loop body
LE: loop exit
PB: predicated region body
PF: predicated region fallthrough
CT: control target
= control target key end

     0   :  { %vm55_vm0 = vcmask 261120   ;;  %s4038_s0 = inlined_call_operand.vmem [shape: f32[128,32], index: 0, kind: input, shape index: {}]   ;;  %s4039_s1 = inlined_call_operand.vmem [shape: f32[128,32], index: 1, kind: input, shape index: {}]   ;;  %s4040_s2 = inlined_call_operand.hbm [shape: f32[1,128], index: 2, kind: output, shape index: {}]  }
   0x1   :  { %v31_v0 = vld [vmem:[%s4038_s0] sm:$0xff]  ;;  %v32_v1 = vld [vmem:[%s4038_s0 + $0x8] sm:$0xff]  ;;  %v33_v6 = vld [vmem:[%s4038_s0 + $0x10] sm:$0xff] }
   0x2   :  { %v1061_v2 = vld [vmem:[%s4038_s0 + $0x40] sm:$0xff]  ;;  %v39_v3 = vmul.f32 14.285714, %v31_v0  ;;  %v40_v4 = vmul.f32 14.285714, %v32_v1  ;;  %v1062_v5 = vld [vmem:[%s4038_s0 + $0x48] sm:$0xff] }
   0x3   :  { %v1069_v7 = vmul.f32 14.285714, %v1061_v2  ;;  %v1070_v8 = vmul.f32 14.285714, %v1062_v5  ;;  %v34_v9 = vld [vmem:[%s4038_s0 + $0x18] sm:$0xff]  ;;  %v1063_v10 = vld [vmem:[%s4038_s0 + $0x50] sm:$0xff] }
   0x4   :  { %v3016_v11 = vsel %vm55_vm0, %v39_v3, 0  ;;  %v3019_v12 = vsel %vm55_vm0, %v40_v4, 0  ;;  %v41_v13 = vmul.f32 14.285714, %v33_v6  ;;  %v42_v14 = vmul.f32 14.285714, %v34_v9 }
   0x5   :  { %v105_v15 = vand.u32 4294901760, %v3016_v11  ;;  %v108_v16 = vand.u32 4294901760, %v3019_v12  ;;  %v3024_v17 = vsel %vm55_vm0, %v1069_v7, 0  ;;  %v3027_v18 = vsel %vm55_vm0, %v1070_v8, 0  ;;  %v1064_v19 = vld [vmem:[%s4038_s0 + $0x58] sm:$0xff]  ;;  %v35_v20 = vld [vmem:[%s4038_s0 + $0x20] sm:$0xff] }
   0x6   :  { %v1134_v21 = vand.u32 4294901760, %v3024_v17  ;;  %v1137_v22 = vand.u32 4294901760, %v3027_v18  ;;  %v3038_v23 = vsel %vm55_vm0, %v41_v13, 0  ;;  %v3041_v24 = vsel %vm55_vm0, %v42_v14, 0  ;;  %v36_v25 = vld [vmem:[%s4038_s0 + $0x28] sm:$0xff]  ;;  %v1065_v26 = vld [vmem:[%s4038_s0 + $0x60] sm:$0xff] }
   0x7   :  { %v3053_v27 = vpack.c.bf16 %v108_v16, %v105_v15  ;;  %v111_v28 = vand.u32 4294901760, %v3038_v23  ;;  %v114_v29 = vand.u32 4294901760, %v3041_v24  ;;  %v1071_v30 = vmul.f32 14.285714, %v1063_v10  ;;  %v1066_v31 = vld [vmem:[%s4038_s0 + $0x68] sm:$0xff]  ;;  %v37_v32 = vld [vmem:[%s4038_s0 + $0x30] sm:$0xff] }
   0x8   :  { %v3067_v33 = vpack.c.bf16 %v1137_v22, %v1134_v21  ;;  %v1072_v34 = vmul.f32 14.285714, %v1064_v19  ;;  %v43_v35 = vmul.f32 14.285714, %v35_v20  ;;  %v44_v36 = vmul.f32 14.285714, %v36_v25 }
   0x9   :  { %2636 = vmatprep.subr.bf16.mxu0 %v3053_v27  ;;  %v3074_v37 = vpack.c.bf16 %v114_v29, %v111_v28  ;;  %v3077_v38 = vsel %vm55_vm0, %v1071_v30, 0  ;;  %v1073_v39 = vmul.f32 14.285714, %v1065_v26  ;;  %v1074_v40 = vmul.f32 14.285714, %v1066_v31  ;;  %v38_v41 = vld [vmem:[%s4038_s0 + $0x38] sm:$0xff] }
   0xa   :  { %2732 = vmatprep.subr.bf16.mxu1 %v3067_v33  ;;  %2638 = vmatpush3.bf16.xpose.msra.mxu0 %v3053_v27  ;;  %v3085_v42 = vsel %vm55_vm0, %v1072_v34, 0  ;;  %v1140_v43 = vand.u32 4294901760, %v3077_v38  ;;  %v3089_v44 = vsel %vm55_vm0, %v43_v35, 0  ;;  %v3092_v45 = vsel %vm55_vm0, %v44_v36, 0  ;;  %v1067_v46 = vld [vmem:[%s4038_s0 + $0x70] sm:$0xff]  ;;  %v1068_v51 = vld [vmem:[%s4038_s0 + $0x78] sm:$0xff] }
   0xb   :  { %2734 = vmatpush3.bf16.xpose.msra.mxu1 %v3067_v33  ;;  %2640 = vmatprep.subr.bf16.mxu0 %v3074_v37  ;;  %v1143_v47 = vand.u32 4294901760, %v3085_v42  ;;  %v117_v48 = vand.u32 4294901760, %v3089_v44  ;;  %v120_v49 = vand.u32 4294901760, %v3092_v45  ;;  %v3103_v50 = vsel %vm55_vm0, %v1073_v39, 0  ;;  %v47_v52 = vld [vmem:[%s4039_s1] sm:$0xff]  ;;  %v48_v9 = vld [vmem:[%s4039_s1 + $0x8] sm:$0xff] }
   0xc   :  { %v3112_v53 = vsel %vm55_vm0, %v1074_v40, 0  ;;  %v1146_v54 = vand.u32 4294901760, %v3103_v50  ;;  %v45_v55 = vmul.f32 14.285714, %v37_v32  ;;  %v46_v56 = vmul.f32 14.285714, %v38_v41 }
   0xd   :  { %v3119_v57 = vpack.c.bf16 %v1143_v47, %v1140_v43  ;;  %v1149_v58 = vand.u32 4294901760, %v3112_v53  ;;  %v1075_v59 = vmul.f32 14.285714, %v1067_v46  ;;  %v1076_v62 = vmul.f32 14.285714, %v1068_v51  ;;  %v1077_v0 = vld [vmem:[%s4039_s1 + $0x40] sm:$0xff] }
   0xe   :  { %v3123_v60 = vsel %vm55_vm0, %v45_v55, 0  ;;  %v3126_v61 = vsel %vm55_vm0, %v46_v56, 0  ;;  %v57_v63 = vsel %vm55_vm0, %v47_v52, 0  ;;  %v3137_v1 = vpack.c.bf16 %v120_v49, %v117_v48 }
   0xf   :  { %2736 = vmatprep.subr.bf16.mxu1 %v3119_v57  ;;  %v123_v2 = vand.u32 4294901760, %v3123_v60  ;;  %v126_v3 = vand.u32 4294901760, %v3126_v61  ;;  %v3142_v4 = vsel %vm55_vm0, %v1075_v59, 0  ;;  %v3148_v5 = vpack.c.bf16 %v1149_v58, %v1146_v54 }
  0x10   :  { %4095 = vst [vmem:[#allocation5_spill] sm:$0xff] %v3137_v1  ;;  %v3151_v6 = vsel %vm55_vm0, %v1076_v62, 0  ;;  %v3153_v7 = vand.u32 4294901760, %v57_v63  ;;  %v3158_v8 = vsub.f32 %v3016_v11, %v105_v15  ;;  %v1152_v13 = vand.u32 4294901760, %v3142_v4 }
  0x11   :  { %4096 = vst [vmem:[#allocation6_spill] sm:$0xff] %v3148_v5  ;;  %v3167_v10 = vpack.c.bf16 %v126_v3, %v123_v2  ;;  %v3173_v14 = vsub.f32 %v3019_v12, %v108_v16  ;;  %v1086_v11 = vsel %vm55_vm0, %v1077_v0, 0  ;;  %v3186_v25 = vsub.f32 %v3024_v17, %v1134_v21  ;;  %v1078_v12 = vld [vmem:[%s4039_s1 + $0x48] sm:$0xff] }
  0x12   :  { %2642 = vmatpush3.bf16.xpose.msra.mxu0 %v3074_v37  ;;  %v3178_v15 = vsub.f32 %v57_v63, %v3153_v7  ;;  %v4062_v19 = vand.u32 4294901760, %v3158_v8  ;;  %v3181_v20 = vand.u32 4294901760, %v1086_v11 }
  0x13   :  { %4097 = vst [vmem:[#allocation7_spill] sm:$0xff] %v3167_v10 }
  0x14   :  { %7 = vsyncpa [#allocation3], 0  ;;  %2738 = vmatpush3.bf16.xpose.msra.mxu1 %v3119_v57  ;;  %2644 = vmatprep.subr.bf16.mxu0 %v3137_v1  ;;  %v1155_v16 = vand.u32 4294901760, %v3151_v6  ;;  %v4055_v26 = vand.u32 4294901760, %v3173_v14  ;;  %v3198_v30 = vsub.f32 %v3027_v18, %v1137_v22  ;;  %v60_v17 = vsel %vm55_vm0, %v48_v9, 0  ;;  %s2978_s15 = smov [#allocation2]  }
  0x15   :  { %2740 = vmatprep.subr.bf16.mxu1 %v3148_v5  ;;  %v4044_v21 = vand.u32 4294901760, %v3178_v15  ;;  %v261_v31 = vsub.f32 %v3158_v8, %v4062_v19  ;;  %v3207_v32 = vsub.f32 %v1086_v11, %v3181_v20  ;;  %v4054_v34 = vand.u32 4294901760, %v3186_v25  ;;  %s2099_s16 = sshll.u32 %s2978_s15, 4  ;;  %s2100_s16 = int_to_ptr.vmem [resolvable:$true] %s2099_s16 }
  0x16   :  { %v268_v18 = vsub.f32 %v3173_v14, %v4055_v26  ;;  %v4052_v22 = vand.u32 4294901760, %v3198_v30  ;;  %v3214_v35 = vand.u32 4294901760, %v60_v17  ;;  %v1089_v36 = vsel %vm55_vm0, %v1078_v12, 0  ;;  %s2953_s17 = scalar_lea.vmem %s2100_s16, 16  ;;  %s2957_s18 = scalar_lea.vmem %s2100_s16, 32 }
  0x17   :  { %v180_v39 = vsub.f32 %v3178_v15, %v4044_v21  ;;  %v262_v40 = vand.u32 4294901760, %v261_v31  ;;  %v4043_v41 = vand.u32 4294901760, %v3207_v32  ;;  %v1290_v46 = vsub.f32 %v3186_v25, %v4054_v34  ;;  %p2954_p0 = scmp.ne.s32.totalorder %s2100_s16, %s2953_s17  ;;  %p2958_p1 = scmp.lt.s32.totalorder %s2100_s16, %s2100_s16 }
  0x18   :  { %v269_v51 = vand.u32 4294901760, %v268_v18  ;;  %v1297_v52 = vsub.f32 %v3198_v30, %v4052_v22  ;;  %v3228_v55 = vsub.f32 %v60_v17, %v3214_v35  ;;  %v3230_v56 = vand.u32 4294901760, %v1089_v36  ;;  %p2959_p2 = scmp.lt.s32.totalorder %s2957_s18, %s2953_s17 }
  0x19   :  { %v3236_v59 = vpack.c.bf16 %v1155_v16, %v1152_v13  ;;  %v181_v62 = vand.u32 4294901760, %v180_v39  ;;  %v1209_v63 = vsub.f32 %v3207_v32, %v4043_v41  ;;  %v3244_v0 = vsub.f32 %v3038_v23, %v111_v28  ;;  %v1079_v41 = vld [vmem:[%s4039_s1 + $0x50] sm:$0xff] }
  0x1a   :  { %v1291_v9 = vand.u32 4294901760, %v1290_v46  ;;  %v1298_v11 = vand.u32 4294901760, %v1297_v52  ;;  %v4042_v12 = vand.u32 4294901760, %v3228_v55  ;;  %v3248_v17 = vsub.f32 %v1089_v36, %v3230_v56  ;;  %2646 = vmatpush3.bf16.xpose.msra.mxu0 %v3137_v1  ;;  %p2960_p3 = por %p2959_p2, %p2958_p1 }
  0x1b   :  { %4098 = vst [vmem:[#allocation8_spill] sm:$0xff] %v3236_v59  ;;  %2315 = vmatprep.mubr.f32.mxu0 %v181_v62  ;;  %v1210_v31 = vand.u32 4294901760, %v1209_v63  ;;  %v4050_v18 = vand.u32 4294901760, %v3244_v0  ;;  %v3255_v39 = vsub.f32 %v3041_v24, %v114_v29  ;;  %v3260_v23 = vsub.f32 %v3077_v38, %v1140_v43  ;;  %2648 = vmatprep.subr.bf16.mxu0 %v3167_v10 }
  0x1c   :  { %2742 = vmatpush3.bf16.xpose.msra.mxu1 %v3148_v5  ;;  %v3264_v28 = vpack.c.bf16 %v269_v51, %v262_v40  ;;  %v3269_v36 = vsub.f32 %v3228_v55, %v4042_v12  ;;  %v4041_v46 = vand.u32 4294901760, %v3248_v17  ;;  %v3275_v24 = vsub.f32 %v3085_v42, %v1143_v47  ;;  %p2961_p4 = pnand %p2960_p3, %p2954_p0 }
  0x1d   :  { %2744 = vmatprep.subr.bf16.mxu1 %v3236_v59  ;;  %2483 = vmatprep.mubr.f32.mxu1 %v1210_v31  ;;  %v275_v29 = vsub.f32 %v3244_v0, %v4050_v18  ;;  %v4049_v38 = vand.u32 4294901760, %v3255_v39  ;;  %v4048_v43 = vand.u32 4294901760, %v3260_v23  ;;  %v3286_v40 = vsub.f32 %v3089_v44, %v117_v48 }
  0x1e   :  { %v3288_v51 = vpack.c.bf16 %v1298_v11, %v1291_v9  ;;  %v191_v42 = vand.u32 4294901760, %v3269_v36  ;;  %v4046_v47 = vand.u32 4294901760, %v3275_v24  ;;  %v3295_v52 = vsub.f32 %v3092_v45, %v120_v49  ;;  %v49_v9 = vld [vmem:[%s4039_s1 + $0x10] sm:$0xff] }
  0x1f   :  { %v1219_v62 = vsub.f32 %v3248_v17, %v4041_v46  ;;  %v282_v44 = vsub.f32 %v3255_v39, %v4049_v38  ;;  %v1304_v48 = vsub.f32 %v3260_v23, %v4048_v43  ;;  %v4045_v63 = vand.u32 4294901760, %v3286_v40 }
  0x20   :  { %v276_v45 = vand.u32 4294901760, %v275_v29  ;;  %v1311_v49 = vsub.f32 %v3275_v24, %v4046_v47  ;;  %v4047_v11 = vand.u32 4294901760, %v3295_v52  ;;  %v3317_v31 = vsub.f32 %v3103_v50, %v1146_v54 }
  0x21   :  { %v283_v36 = vand.u32 4294901760, %v282_v44  ;;  %v1305_v46 = vand.u32 4294901760, %v1304_v48  ;;  %v289_v12 = vsub.f32 %v3286_v40, %v4045_v63  ;;  %v3325_v29 = vsub.f32 %v3112_v53, %v1149_v58  ;;  %v50_v48 = vld [vmem:[%s4039_s1 + $0x18] sm:$0xff] }
  0x22   :  { %v1312_v21 = vand.u32 4294901760, %v1311_v49  ;;  %v296_v50 = vsub.f32 %v3295_v52, %v4047_v11  ;;  %v4051_v54 = vand.u32 4294901760, %v3317_v31  ;;  %v63_v44 = vsel %vm55_vm0, %v49_v9, 0  ;;  %2650 = vmatpush3.bf16.xpose.msra.mxu0 %v3167_v10  ;;  %v1080_v49 = vld [vmem:[%s4039_s1 + $0x58] sm:$0xff] }
  0x23   :  { %v1220_v53 = vand.u32 4294901760, %v1219_v62  ;;  %v290_v58 = vand.u32 4294901760, %v289_v12  ;;  %v4053_v63 = vand.u32 4294901760, %v3325_v29  ;;  %v3340_v47 = vand.u32 4294901760, %v63_v44  ;;  %2652 = vmatprep.subr.bf16.mxu0 %v3264_v28 }
  0x24   :  { %2746 = vmatpush3.bf16.xpose.msra.mxu1 %v3236_v59  ;;  %v3347_v9 = vpack.c.bf16 %v283_v36, %v276_v45  ;;  %v297_v11 = vand.u32 4294901760, %v296_v50  ;;  %v1318_v62 = vsub.f32 %v3317_v31, %v4051_v54  ;;  %v1092_v12 = vsel %vm55_vm0, %v1079_v41, 0  ;;  %v51_v36 = vld [vmem:[%s4039_s1 + $0x20] sm:$0xff] }
  0x25   :  { %2748 = vmatprep.subr.bf16.mxu1 %v3288_v51  ;;  %v1325_v43 = vsub.f32 %v3325_v29, %v4053_v63  ;;  %v3358_v38 = vsub.f32 %v63_v44, %v3340_v47  ;;  %v3360_v18 = vand.u32 4294901760, %v1092_v12  ;;  %v66_v45 = vsel %vm55_vm0, %v50_v48, 0 }
  0x26   :  { %v3366_v50 = vpack.c.bf16 %v1312_v21, %v1305_v46  ;;  %v3368_v41 = vpack.c.bf16 %v297_v11, %v290_v58  ;;  %v3370_v54 = vand.u32 4294901760, %v66_v45  ;;  %v1095_v22 = vsel %vm55_vm0, %v1080_v49, 0  ;;  %v1081_v58 = vld [vmem:[%s4039_s1 + $0x60] sm:$0xff] }
  0x27   :  { %v1319_v63 = vand.u32 4294901760, %v1318_v62  ;;  %v4056_v44 = vand.u32 4294901760, %v3358_v38  ;;  %v3375_v34 = vsub.f32 %v1092_v12, %v3360_v18  ;;  %v3377_v26 = vand.u32 4294901760, %v1095_v22 }
  0x28   :  { %v3380_v48 = vsub.f32 %v66_v45, %v3370_v54  ;;  %v69_v21 = vsel %vm55_vm0, %v51_v36, 0  ;;  %v3386_v46 = vsub.f32 %v3123_v60, %v123_v2  ;;  %v3391_v11 = vsub.f32 %v3126_v61, %v126_v3 }
  0x29   :  { %v1326_v49 = vand.u32 4294901760, %v1325_v43  ;;  %v200_v62 = vsub.f32 %v3358_v38, %v4056_v44  ;;  %v4058_v12 = vand.u32 4294901760, %v3375_v34  ;;  %v3401_v45 = vsub.f32 %v1095_v22, %v3377_v26  ;;  %2316 = vmatmul.mubr.f32.vlgmr.msra.gmra.mrb[0].mxu0 %v191_v42 }
  0x2a   :  { %4099 = vst [vmem:[#allocation9_spill] sm:$0xff] %v3380_v48  ;;  %v4057_v60 = vand.u32 4294901760, %v3380_v48  ;;  %v3404_v2 = vand.u32 4294901760, %v69_v21  ;;  %v4060_v61 = vand.u32 4294901760, %v3386_v46  ;;  %v4061_v3 = vand.u32 4294901760, %v3391_v11  ;;  %2654 = vmatpush3.bf16.xpose.msra.mxu0 %v3264_v28 }
  0x2b   :  { %4100 = vst [vmem:[#allocation10_spill] sm:$0xff] %v3401_v45  ;;  %2484 = vmatmul.mubr.f32.vlgmr.msra.gmra.mrb[0].mxu1 %v1220_v53  ;;  %v201_v43 = vand.u32 4294901760, %v200_v62  ;;  %v1229_v36 = vsub.f32 %v3375_v34, %v4058_v12  ;;  %v4059_v22 = vand.u32 4294901760, %v3401_v45  ;;  %v1098_v42 = vsel %vm55_vm0, %v1081_v58, 0  ;;  %2656 = vmatprep.subr.bf16.mxu0 %v3347_v9  ;;  %v52_v12 = vld [vmem:[%s4039_s1 + $0x28] sm:$0xff] }
  0x2c   :  { %2750 = vmatpush3.bf16.xpose.msra.mxu1 %v3288_v51  ;;  %v210_v44 = vsub.f32 %v3380_v48, %v4057_v60  ;;  %v3420_v28 = vsub.f32 %v69_v21, %v3404_v2  ;;  %v303_v53 = vsub.f32 %v3386_v46, %v4060_v61  ;;  %v3425_v62 = vand.u32 4294901760, %v1098_v42 }
  0x2d   :  { %2752 = vmatprep.subr.bf16.mxu1 %v3366_v50  ;;  %2318 = vmatprep.mubr.f32.mxu0 %v201_v43  ;;  %v1230_v58 = vand.u32 4294901760, %v1229_v36  ;;  %v1239_v51 = vsub.f32 %v3401_v45, %v4059_v22  ;;  %v310_v60 = vsub.f32 %v3391_v11, %v4061_v3  ;;  %v3437_v21 = vsub.f32 %v3142_v4, %v1152_v13  ;;  %v1082_v43 = vld [vmem:[%s4039_s1 + $0x68] sm:$0xff] }
  0x2e   :  { %4101 = vst [vmem:[#allocation11_spill] sm:$0xff] %v3420_v28  ;;  %v3445_v36 = vpack.c.bf16 %v1326_v49, %v1319_v63  ;;  %v211_v22 = vand.u32 4294901760, %v210_v44  ;;  %v4065_v61 = vand.u32 4294901760, %v3420_v28  ;;  %v3449_v3 = vsub.f32 %v1098_v42, %v3425_v62  ;;  %v53_v63 = vld [vmem:[%s4039_s1 + $0x30] sm:$0xff] }
  0x2f   :  { %2486 = vmatprep.mubr.f32.mxu1 %v1230_v58  ;;  %v1240_v19 = vand.u32 4294901760, %v1239_v51  ;;  %v304_v4 = vand.u32 4294901760, %v303_v53  ;;  %v4066_v13 = vand.u32 4294901760, %v3437_v21  ;;  %v3455_v59 = vsub.f32 %v3151_v6, %v1155_v16 }
  0x30   :  { %4102 = vst [vmem:[#allocation12_spill] sm:$0xff] %v3449_v3  ;;  %2319 = vmatmul.mubr.f32.gmra.mrb[2].mxu0 %v211_v22  ;;  %v220_v44 = vsub.f32 %v3420_v28, %v4065_v61  ;;  %v4073_v49 = vand.u32 4294901760, %v3449_v3  ;;  %v72_v42 = vsel %vm55_vm0, %v52_v12, 0  ;;  %v1101_v53 = vsel %vm55_vm0, %v1082_v43, 0  ;;  %v1083_v22 = vld [vmem:[%s4039_s1 + $0x70] sm:$0xff]  ;;  %v54_v12 = vld [vmem:[%s4039_s1 + $0x38] sm:$0xff] }
  0x31   :  { %2487 = vmatmul.mubr.f32.gmra.mrb[2].mxu1 %v1240_v19  ;;  %v311_v58 = vand.u32 4294901760, %v310_v60  ;;  %v1332_v6 = vsub.f32 %v3437_v21, %v4066_v13  ;;  %v4074_v16 = vand.u32 4294901760, %v3455_v59  ;;  %v3470_v51 = vand.u32 4294901760, %v72_v42 }
  0x32   :  { %v221_v61 = vand.u32 4294901760, %v220_v44  ;;  %v1249_v19 = vsub.f32 %v3449_v3, %v4073_v49  ;;  %v3481_v60 = vand.u32 4294901760, %v1101_v53  ;;  %v75_v43 = vsel %vm55_vm0, %v53_v63, 0  ;;  %2658 = vmatpush3.bf16.xpose.msra.mxu0 %v3347_v9  ;;  %v1084_v44 = vld [vmem:[%s4039_s1 + $0x78] sm:$0xff]  ;;  %s2977_s1 = smov 64  }
  0x33   :  { %v1333_v13 = vand.u32 4294901760, %v1332_v6  ;;  %v1339_v10 = vsub.f32 %v3455_v59, %v4074_v16  ;;  %v3489_v5 = vsub.f32 %v72_v42, %v3470_v51  ;;  %v3491_v1 = vand.u32 4294901760, %v75_v43  ;;  %2660 = vmatprep.subr.bf16.mxu0 %v3368_v41 }
  0x34   :  { %2754 = vmatpush3.bf16.xpose.msra.mxu1 %v3366_v50  ;;  %v1250_v63 = vand.u32 4294901760, %v1249_v19  ;;  %v3499_v9 = vsub.f32 %v1101_v53, %v3481_v60  ;;  %v1104_v6 = vsel %vm55_vm0, %v1083_v22, 0  ;;  %v78_v49 = vsel %vm55_vm0, %v54_v12, 0  ;;  %2321 = vmatprep.mubr.f32.mxu0 %v221_v61 }
  0x35   :  { %4103 = vst [vmem:[#allocation13_spill] sm:$0xff] %v3489_v5  ;;  %2756 = vmatprep.subr.bf16.mxu1 %v3445_v36  ;;  %v1340_v42 = vand.u32 4294901760, %v1339_v10  ;;  %v4083_v16 = vand.u32 4294901760, %v3489_v5  ;;  %v3506_v3 = vsub.f32 %v75_v43, %v3491_v1  ;;  %v3508_v50 = vand.u32 4294901760, %v1104_v6 }
  0x36   :  { %2489 = vmatprep.mubr.f32.mxu1 %v1250_v63  ;;  %v4088_v19 = vand.u32 4294901760, %v3499_v9  ;;  %v3511_v53 = vand.u32 4294901760, %v78_v49  ;;  %v1107_v22 = vsel %vm55_vm0, %v1084_v44, 0  ;;  %v2663_v43 = vpack.c.bf16 %v311_v58, %v304_v4 }
  0x37   :  { %v230_v12 = vsub.f32 %v3489_v5, %v4083_v16  ;;  %v4087_v10 = vand.u32 4294901760, %v3506_v3  ;;  %v3519_v61 = vsub.f32 %v1104_v6, %v3508_v50  ;;  %v3527_v45 = vand.u32 4294901760, %v1107_v22 }
  0x38   :  { %v1259_v63 = vsub.f32 %v3499_v9, %v4088_v19  ;;  %v3525_v28 = vsub.f32 %v78_v49, %v3511_v53  ;;  %v2759_v44 = vpack.c.bf16 %v1340_v42, %v1333_v13  ;;  %v4111_v19 = vand.u32 4294901760, %v3244_v0 }
  0x39   :  { %v231_v48 = vand.u32 4294901760, %v230_v12  ;;  %v240_v16 = vsub.f32 %v3506_v3, %v4087_v10  ;;  %v4086_v5 = vand.u32 4294901760, %v3519_v61  ;;  %v3535_v58 = vsub.f32 %v1107_v22, %v3527_v45 }
  0x3a   :  { %4104 = vst [vmem:[#allocation14_spill] sm:$0xff] %v3525_v28  ;;  %v1260_v6 = vand.u32 4294901760, %v1259_v63  ;;  %v4089_v4 = vand.u32 4294901760, %v3525_v28  ;;  %2662 = vmatpush3.bf16.xpose.msra.mxu0 %v3368_v41  ;;  %v4105_v63 = vand.u32 4294901760, %v3158_v8  ;;  %v4106_v41 = vand.u32 4294901760, %v3173_v14 }
  0x3b   :  { %v241_v49 = vand.u32 4294901760, %v240_v16  ;;  %v1269_v13 = vsub.f32 %v3519_v61, %v4086_v5  ;;  %2664 = vmatprep.subr.bf16.mxu0 %v2663_v43  ;;  %2322 = vmatmul.mubr.f32.gmra.mrb[4].mxu0 %v231_v48  ;;  %v4108_v5 = vand.u32 4294901760, %v3186_v25  ;;  %vm950_vm2 = vcmask 523264  }
  0x3c   :  { %2758 = vmatpush3.bf16.xpose.msra.mxu1 %v3445_v36  ;;  %v250_v42 = vsub.f32 %v3525_v28, %v4089_v4  ;;  %v3550_v16 = vpack.c.bf16 %v4106_v41, %v4105_v63  ;;  %v4109_v36 = vand.u32 4294901760, %v3198_v30  ;;  %v4112_v4 = vand.u32 4294901760, %v3255_v39 }
  0x3d   :  { %2760 = vmatprep.subr.bf16.mxu1 %v2759_v44  ;;  %v1270_v22 = vand.u32 4294901760, %v1269_v13  ;;  %2490 = vmatmul.mubr.f32.gmra.mrb[4].mxu1 %v1260_v6  ;;  %v4113_v13 = vand.u32 4294901760, %v3535_v58  ;;  %v4114_v41 = vand.u32 4294901760, %v3260_v23  ;;  %v4120_v6 = vand.u32 4294901760, %v3325_v29 }
  0x3e   :  { %4107 = vst [vmem:[#allocation15_spill] sm:$0xff] %v3550_v16  ;;  %v3556_v10 = vpack.c.bf16 %v4109_v36, %v4108_v5  ;;  %v3562_v12 = vpack.c.bf16 %v4112_v4, %v4111_v19  ;;  %2324 = vmatprep.mubr.f32.mxu0 %v241_v49  ;;  %v251_v48 = vand.u32 4294901760, %v250_v42  ;;  %v4115_v16 = vand.u32 4294901760, %v3275_v24 }
  0x3f   :  { %v1279_v63 = vsub.f32 %v3535_v58, %v4113_v13  ;;  %v4117_v5 = vand.u32 4294901760, %v3286_v40  ;;  %v4118_v36 = vand.u32 4294901760, %v3295_v52  ;;  %2492 = vmatprep.mubr.f32.mxu1 %v1270_v22  ;;  %v4119_v19 = vand.u32 4294901760, %v3317_v31 }
  0x40   :  { %4110 = vst [vmem:[#allocation16_spill] sm:$0xff] %v3556_v10  ;;  %v3571_v28 = vpack.c.bf16 %v4115_v16, %v4114_v41  ;;  %v4121_v49 = vand.u32 4294901760, %v3386_v46  ;;  %v4122_v42 = vand.u32 4294901760, %v3391_v11  ;;  %v4123_v16 = vand.u32 4294901760, %v3437_v21  ;;  %2325 = vmatmul.mubr.f32.gmra.mrb[6].mxu0 %v251_v48 }
  0x41   :  { %v3577_v10 = vpack.c.bf16 %v4118_v36, %v4117_v5  ;;  %v3583_v4 = vpack.c.bf16 %v4120_v6, %v4119_v19  ;;  %v4124_v41 = vand.u32 4294901760, %v3455_v59  ;;  %v1280_v5 = vand.u32 4294901760, %v1279_v63  ;;  %2343 = vmatprep.mubr.f32.mxu0 %v3153_v7 }
  0x42   :  { %4116 = vst [vmem:[#allocation17_spill] sm:$0xff] %v3571_v28  ;;  %v3589_v13 = vpack.c.bf16 %v4122_v42, %v4121_v49  ;;  %v2667_v22 = vpack.c.bf16 %v3173_v14, %v3158_v8  ;;  %v2763_v36 = vpack.c.bf16 %v3198_v30, %v3186_v25  ;;  %2666 = vmatpush3.bf16.xpose.msra.mxu0 %v2663_v43  ;;  %v4142_v6 = vand.u32 4294901760, %v3358_v38 }
  0x43   :  { %v3595_v28 = vpack.c.bf16 %v4124_v41, %v4123_v16  ;;  %2493 = vmatmul.mubr.f32.gmra.mrb[6].mxu1 %v1280_v5  ;;  %v2671_v19 = vpack.c.bf16 %v3255_v39, %v3244_v0  ;;  %v2767_v63 = vpack.c.bf16 %v3275_v24, %v3260_v23  ;;  %v2675_v8 = vpack.c.bf16 %v3295_v52, %v3286_v40  ;;  %v4126_v0 = vld [vmem:[#allocation10_spill] sm:$0xff]  ;;  %v4127_v39 = vld [vmem:[#allocation11_spill] sm:$0xff]  ;;  %v4128_v23 = vld [vmem:[#allocation12_spill] sm:$0xff] }
  0x44   :  { %2511 = vmatprep.mubr.f32.mxu1 %v3181_v20  ;;  %2762 = vmatpush3.bf16.xpose.msra.mxu1 %v2759_v44  ;;  %v2771_v14 = vpack.c.bf16 %v3325_v29, %v3317_v31  ;;  %v2679_v25 = vpack.c.bf16 %v3391_v11, %v3386_v46  ;;  %v2775_v30 = vpack.c.bf16 %v3455_v59, %v3437_v21  ;;  %v4125_v59 = vld [vmem:[#allocation9_spill] sm:$0xff]  ;;  %v4131_v52 = vld [vmem:[#allocation6_spill] sm:$0xff]  ;;  %v4133_v29 = vand.u32 4294901760, %v3178_v15  ;;  %v4135_v11 = vld [vmem:[#allocation7_spill] sm:$0xff] }
  0x45   :  { %2668 = vmatprep.subr.bf16.mxu0 %v2667_v22  ;;  %2764 = vmatprep.subr.bf16.mxu1 %v2763_v36  ;;  %v4129_v24 = vld [vmem:[#allocation13_spill] sm:$0xff]  ;;  %v4132_v31 = vld [vmem:[#allocation14_spill] sm:$0xff]  ;;  %v4134_v46 = vand.u32 4294901760, %v3207_v32  ;;  %v4136_v21 = vld [vmem:[#allocation8_spill] sm:$0xff]  ;;  %v4143_v49 = vand.u32 4294901760, %v3375_v34  ;;  %v4145_v42 = vand.u32 4294901760, %v4126_v0 }
  0x46   :  { %v4130_v40 = vld [vmem:[#allocation5_spill] sm:$0xff]  ;;  %v4137_v43 = vld [vmem:[#allocation15_spill] sm:$0xff]  ;;  %v4147_v16 = vand.u32 4294901760, %v4128_v23  ;;  %v4148_v41 = vand.u32 4294901760, %v4129_v24  ;;  %v4151_v5 = vand.u32 4294901760, %v3519_v61  ;;  %vm1059_vm10 = vcmask 516096  }
  0x47   :  { %v4138_v44 = vld [vmem:[#allocation16_spill] sm:$0xff]  ;;  %vm2091_vm11 = vcmask 1040896  }
  0x49   :  { %2344 = vmatmul.mubr.f32.vlgmr.msra.gmra.mrb[0].mxu0 %v3214_v35  ;;  %v4141_v48 = vld [vmem:[#allocation17_spill] sm:$0xff] }
  0x4a   :  { %2670 = vmatpush3.bf16.xpose.msra.mxu0 %v2667_v22  ;;  %2346 = vmatprep.mubr.f32.mxu0 %v3340_v47  ;;  %v4152_v22 = vand.u32 4294901760, %v4132_v31 }
  0x4b   :  { %2512 = vmatmul.mubr.f32.vlgmr.msra.gmra.mrb[0].mxu1 %v3230_v56  ;;  %2672 = vmatprep.subr.bf16.mxu0 %v2671_v19 }
  0x4c   :  { %2766 = vmatpush3.bf16.xpose.msra.mxu1 %v2763_v36  ;;  %2514 = vmatprep.mubr.f32.mxu1 %v3360_v18 }
  0x4d   :  { %2768 = vmatprep.subr.bf16.mxu1 %v2767_v63  ;;  %2347 = vmatmul.mubr.f32.gmra.mrb[2].mxu0 %v3370_v54 }
  0x4e   :  { %2349 = vmatprep.mubr.f32.mxu0 %v3404_v2 }
  0x4f   :  { %2515 = vmatmul.mubr.f32.gmra.mrb[2].mxu1 %v3377_v26 }
  0x50   :  { %2517 = vmatprep.mubr.f32.mxu1 %v3425_v62 }
  0x51   :  { %2350 = vmatmul.mubr.f32.gmra.mrb[4].mxu0 %v3470_v51 }
  0x52   :  { %2674 = vmatpush3.bf16.xpose.msra.mxu0 %v2671_v19  ;;  %2352 = vmatprep.mubr.f32.mxu0 %v3491_v1 }
  0x53   :  { %2518 = vmatmul.mubr.f32.gmra.mrb[4].mxu1 %v3481_v60  ;;  %2676 = vmatprep.subr.bf16.mxu0 %v2675_v8 }
  0x54   :  { %2770 = vmatpush3.bf16.xpose.msra.mxu1 %v2767_v63  ;;  %2520 = vmatprep.mubr.f32.mxu1 %v3508_v50 }
  0x55   :  { %2772 = vmatprep.subr.bf16.mxu1 %v2771_v14  ;;  %2353 = vmatmul.mubr.f32.gmra.mrb[6].mxu0 %v3511_v53 }
  0x56   :  { %2371 = vmatprep.mubr.f32.mxu0 %v3178_v15  ;;  %v4139_v15 = vand.u32 4294901760, %v3228_v55 }
  0x57   :  { %2521 = vmatmul.mubr.f32.gmra.mrb[6].mxu1 %v3527_v45 }
  0x58   :  { %2539 = vmatprep.mubr.f32.mxu1 %v3207_v32  ;;  %v4140_v32 = vand.u32 4294901760, %v3248_v17 }
  0x5a   :  { %2678 = vmatpush3.bf16.xpose.msra.mxu0 %v2675_v8 }
  0x5b   :  { %2680 = vmatprep.subr.bf16.mxu0 %v2679_v25 }
  0x5c   :  { %2774 = vmatpush3.bf16.xpose.msra.mxu1 %v2771_v14 }
  0x5d   :  { %2776 = vmatprep.subr.bf16.mxu1 %v2775_v30 }
  0x62   :  { %2682 = vmatpush3.bf16.xpose.msra.mxu0 %v2679_v25 }
  0x63   :  { %2684 = vmatprep.subr.bf16.mxu0 %v3053_v27 }
  0x64   :  { %2778 = vmatpush3.bf16.xpose.msra.mxu1 %v2775_v30 }
  0x65   :  { %2780 = vmatprep.subr.bf16.mxu1 %v3067_v33 }
  0x69   :  { %2372 = vmatmul.mubr.f32.vlgmr.msra.gmra.mrb[0].mxu0 %v3228_v55  ;;  %v4144_v55 = vand.u32 4294901760, %v4125_v59 }
  0x6a   :  { %2686 = vmatpush3.bf16.xpose.msra.mxu0 %v3053_v27  ;;  %2374 = vmatprep.mubr.f32.mxu0 %v3358_v38  ;;  %v4150_v38 = vand.u32 4294901760, %v3506_v3 }
  0x6b   :  { %2540 = vmatmul.mubr.f32.vlgmr.msra.gmra.mrb[0].mxu1 %v3248_v17  ;;  %2688 = vmatprep.subr.bf16.mxu0 %v3074_v37  ;;  %v4146_v17 = vand.u32 4294901760, %v4127_v39 }
  0x6c   :  { %2782 = vmatpush3.bf16.xpose.msra.mxu1 %v3067_v33  ;;  %2542 = vmatprep.mubr.f32.mxu1 %v3375_v34  ;;  %v4149_v34 = vand.u32 4294901760, %v3499_v9 }
  0x6d   :  { %2784 = vmatprep.subr.bf16.mxu1 %v3119_v57  ;;  %2375 = vmatmul.mubr.f32.gmra.mrb[2].mxu0 %v4125_v59 }
  0x6e   :  { %2377 = vmatprep.mubr.f32.mxu0 %v4127_v39 }
  0x6f   :  { %2543 = vmatmul.mubr.f32.gmra.mrb[2].mxu1 %v4126_v0 }
  0x70   :  { %2545 = vmatprep.mubr.f32.mxu1 %v4128_v23 }
  0x71   :  { %2378 = vmatmul.mubr.f32.gmra.mrb[4].mxu0 %v4129_v24 }
  0x72   :  { %2690 = vmatpush3.bf16.xpose.msra.mxu0 %v3074_v37  ;;  %2380 = vmatprep.mubr.f32.mxu0 %v3506_v3 }
  0x73   :  { %2546 = vmatmul.mubr.f32.gmra.mrb[4].mxu1 %v3499_v9  ;;  %2692 = vmatprep.subr.bf16.mxu0 %v4130_v40 }
  0x74   :  { %2786 = vmatpush3.bf16.xpose.msra.mxu1 %v3119_v57  ;;  %2548 = vmatprep.mubr.f32.mxu1 %v3519_v61 }
  0x75   :  { %2788 = vmatprep.subr.bf16.mxu1 %v4131_v52  ;;  %2381 = vmatmul.mubr.f32.gmra.mrb[6].mxu0 %v4132_v31 }
  0x76   :  { %2399 = vmatprep.mubr.f32.mxu0 %v4133_v29 }
  0x77   :  { %2549 = vmatmul.mubr.f32.gmra.mrb[6].mxu1 %v3535_v58 }
  0x78   :  { %2567 = vmatprep.mubr.f32.mxu1 %v4134_v46 }
  0x7a   :  { %2694 = vmatpush3.bf16.xpose.msra.mxu0 %v4130_v40 }
  0x7b   :  { %2696 = vmatprep.subr.bf16.mxu0 %v4135_v11 }
  0x7c   :  { %2790 = vmatpush3.bf16.xpose.msra.mxu1 %v4131_v52 }
  0x7d   :  { %2792 = vmatprep.subr.bf16.mxu1 %v4136_v21 }
  0x82   :  { %2698 = vmatpush3.bf16.xpose.msra.mxu0 %v4135_v11 }
  0x83   :  { %2700 = vmatprep.subr.bf16.mxu0 %v4137_v43 }
  0x84   :  { %2794 = vmatpush3.bf16.xpose.msra.mxu1 %v4136_v21 }
  0x85   :  { %2796 = vmatprep.subr.bf16.mxu1 %v4138_v44 }
  0x89   :  { %2400 = vmatmul.mubr.f32.vlgmr.msra.gmra.mrb[0].mxu0 %v4139_v15 }
  0x8a   :  { %2702 = vmatpush3.bf16.xpose.msra.mxu0 %v4137_v43  ;;  %2402 = vmatprep.mubr.f32.mxu0 %v4142_v6 }
  0x8b   :  { %2568 = vmatmul.mubr.f32.vlgmr.msra.gmra.mrb[0].mxu1 %v4140_v32  ;;  %2704 = vmatprep.subr.bf16.mxu0 %v3562_v12 }
  0x8c   :  { %2798 = vmatpush3.bf16.xpose.msra.mxu1 %v4138_v44  ;;  %2570 = vmatprep.mubr.f32.mxu1 %v4143_v49 }
  0x8d   :  { %2800 = vmatprep.subr.bf16.mxu1 %v4141_v48  ;;  %2403 = vmatmul.mubr.f32.gmra.mrb[2].mxu0 %v4144_v55 }
  0x8e   :  { %2405 = vmatprep.mubr.f32.mxu0 %v4146_v17 }
  0x8f   :  { %2571 = vmatmul.mubr.f32.gmra.mrb[2].mxu1 %v4145_v42 }
  0x90   :  { %2573 = vmatprep.mubr.f32.mxu1 %v4147_v16 }
  0x91   :  { %2406 = vmatmul.mubr.f32.gmra.mrb[4].mxu0 %v4148_v41 }
  0x92   :  { %2706 = vmatpush3.bf16.xpose.msra.mxu0 %v3562_v12  ;;  %2408 = vmatprep.mubr.f32.mxu0 %v4150_v38  ;;  %v4153_v12 = vand.u32 4294901760, %v3535_v58 }
  0x93   :  { %2574 = vmatmul.mubr.f32.gmra.mrb[4].mxu1 %v4149_v34  ;;  %2708 = vmatprep.subr.bf16.mxu0 %v3577_v10 }
  0x94   :  { %2802 = vmatpush3.bf16.xpose.msra.mxu1 %v4141_v48  ;;  %2576 = vmatprep.mubr.f32.mxu1 %v4151_v5 }
  0x95   :  { %2804 = vmatprep.subr.bf16.mxu1 %v3583_v4  ;;  %2409 = vmatmul.mubr.f32.gmra.mrb[6].mxu0 %v4152_v22 }
  0x96   :  { %2427 = vmatprep.mubr.f32.mxu0 %v3153_v7 }
  0x97   :  { %2577 = vmatmul.mubr.f32.gmra.mrb[6].mxu1 %v4153_v12 }
  0x98   :  { %2595 = vmatprep.mubr.f32.mxu1 %v3181_v20 }
  0x9a   :  { %2710 = vmatpush3.bf16.xpose.msra.mxu0 %v3577_v10 }
  0x9b   :  { %2712 = vmatprep.subr.bf16.mxu0 %v3589_v13 }
  0x9c   :  { %2806 = vmatpush3.bf16.xpose.msra.mxu1 %v3583_v4 }
  0x9d   :  { %2808 = vmatprep.subr.bf16.mxu1 %v3595_v28 }
  0xa2   :  { %2714 = vmatpush3.bf16.xpose.msra.mxu0 %v3589_v13 }
  0xa3   :  { %2716 = vmatprep.subr.bf16.mxu0 %v3053_v27 }
  0xa4   :  { %2810 = vmatpush3.bf16.xpose.msra.mxu1 %v3595_v28 }
  0xa5   :  { %2812 = vmatprep.subr.bf16.mxu1 %v3067_v33 }
  0xa9   :  { %2428 = vmatmul.mubr.f32.vlgmr.msra.gmra.mrb[0].mxu0 %v3214_v35 }
  0xaa   :  { %2718 = vmatpush3.bf16.xpose.msra.mxu0 %v3053_v27  ;;  %2430 = vmatprep.mubr.f32.mxu0 %v3340_v47  ;;  %v12_v27 = vlaneseq }
  0xab   :  { %2596 = vmatmul.mubr.f32.vlgmr.msra.gmra.mrb[0].mxu1 %v3230_v56  ;;  %2720 = vmatprep.subr.bf16.mxu0 %v3074_v37 }
  0xac   :  { %2814 = vmatpush3.bf16.xpose.msra.mxu1 %v3067_v33  ;;  %2598 = vmatprep.mubr.f32.mxu1 %v3360_v18  ;;  %v15_v33 = vshrl.u32 %v12_v27, 7 }
  0xad   :  { %2816 = vmatprep.subr.bf16.mxu1 %v3119_v57  ;;  %2431 = vmatmul.mubr.f32.gmra.mrb[2].mxu0 %v3370_v54 }
  0xae   :  { %2433 = vmatprep.mubr.f32.mxu0 %v3404_v2  ;;  %v3800_v58 = vadd.s32 48, %v15_v33 }
  0xaf   :  { %2599 = vmatmul.mubr.f32.gmra.mrb[2].mxu1 %v3377_v26 }
  0xb0   :  { %2601 = vmatprep.mubr.f32.mxu1 %v3425_v62 }
  0xb1   :  { %2434 = vmatmul.mubr.f32.gmra.mrb[4].mxu0 %v3470_v51 }
  0xb2   :  { %2722 = vmatpush3.bf16.xpose.msra.mxu0 %v3074_v37  ;;  %2436 = vmatprep.mubr.f32.mxu0 %v3491_v1  ;;  %v3757_v37 = vand.u32 127, %v12_v27 }
  0xb3   :  { %2602 = vmatmul.mubr.f32.gmra.mrb[4].mxu1 %v3481_v60  ;;  %2724 = vmatprep.subr.bf16.mxu0 %v4130_v40 }
  0xb4   :  { %2818 = vmatpush3.bf16.xpose.msra.mxu1 %v3119_v57  ;;  %2604 = vmatprep.mubr.f32.mxu1 %v3508_v50  ;;  %v16_v57 = vadd.s32 8, %v15_v33  ;;  %vm23_vm3 = vcmp.eq.s32.totalorder %v15_v33, %v3757_v37  ;;  %vm29_vm9 = vcmp.eq.s32.totalorder %v3800_v58, %v3757_v37 }
  0xb5   :  { %2820 = vmatprep.subr.bf16.mxu1 %v4131_v52  ;;  %2437 = vmatmul.mubr.f32.gmra.mrb[6].mxu0 %v3511_v53 }
  0xb6   :  { %2455 = vmatprep.mubr.f32.mxu0 %v3153_v7  ;;  %v18_v7 = vadd.s32 24, %v15_v33  ;;  %vm24_vm1 = vcmp.eq.s32.totalorder %v16_v57, %v3757_v37 }
  0xb7   :  { %2605 = vmatmul.mubr.f32.gmra.mrb[6].mxu1 %v3527_v45 }
  0xb8   :  { %2623 = vmatprep.mubr.f32.mxu1 %v3181_v20  ;;  %v17_v20 = vadd.s32 16, %v15_v33  ;;  %vm26_vm4 = vcmp.eq.s32.totalorder %v18_v7, %v3757_v37 }
  0xba   :  { %2726 = vmatpush3.bf16.xpose.msra.mxu0 %v4130_v40  ;;  %vm25_vm5 = vcmp.eq.s32.totalorder %v17_v20, %v3757_v37 }
  0xbb   :  { %2728 = vmatprep.subr.bf16.mxu0 %v4135_v11 }
  0xbc   :  { %2822 = vmatpush3.bf16.xpose.msra.mxu1 %v4131_v52 }
  0xbd   :  { %2824 = vmatprep.subr.bf16.mxu1 %v4136_v21 }
  0xc2   :  { %2730 = vmatpush3.bf16.xpose.msra.mxu0 %v4135_v11 }
  0xc4   :  { %2826 = vmatpush3.bf16.xpose.msra.mxu1 %v4136_v21 }
  0xc9   :  { %2456 = vmatmul.mubr.f32.vlgmr.msra.gmra.mrb[0].mxu0 %v3214_v35  ;;  %v3762_v35 = vadd.s32 32, %v15_v33 }
  0xca   :  { %2458 = vmatprep.mubr.f32.mxu0 %v3340_v47 }
  0xcb   :  { %2624 = vmatmul.mubr.f32.vlgmr.msra.gmra.mrb[0].mxu1 %v3230_v56  ;;  %vm27_vm7 = vcmp.eq.s32.totalorder %v3762_v35, %v3757_v37 }
  0xcc   :  { %2626 = vmatprep.mubr.f32.mxu1 %v3360_v18 }
  0xcd   :  { %2459 = vmatmul.mubr.f32.gmra.mrb[2].mxu0 %v3370_v54  ;;  %v3771_v54 = vadd.s32 56, %v15_v33 }
  0xce   :  { %2461 = vmatprep.mubr.f32.mxu0 %v3404_v2 }
  0xcf   :  { %2627 = vmatmul.mubr.f32.gmra.mrb[2].mxu1 %v3377_v26  ;;  %v3759_v26 = vadd.s32 40, %v15_v33  ;;  %vm30_vm8 = vcmp.eq.s32.totalorder %v3771_v54, %v3757_v37 }
  0xd0   :  { %2629 = vmatprep.mubr.f32.mxu1 %v3425_v62 }
  0xd1   :  { %2462 = vmatmul.mubr.f32.gmra.mrb[4].mxu0 %v3470_v51  ;;  %vm28_vm6 = vcmp.eq.s32.totalorder %v3759_v26, %v3757_v37 }
  0xd2   :  { %2464 = vmatprep.mubr.f32.mxu0 %v3491_v1 }
  0xd3   :  { %2630 = vmatmul.mubr.f32.gmra.mrb[4].mxu1 %v3481_v60 }
  0xd4   :  { %2632 = vmatprep.mubr.f32.mxu1 %v3508_v50 }
  0xd5   :  { %2465 = vmatmul.mubr.f32.gmra.mrb[6].mxu0 %v3511_v53 }
  0xd7   :  { %2633 = vmatmul.mubr.f32.gmra.mrb[6].mxu1 %v3527_v45 }
 0x19c   :  { %v2457_v1 = vpop.f32.mrb[0].mxu0 }
 0x19d   :  { %v943_v56 = vsel %vm24_vm1, %v2457_v1, 0.0  ;;  %v896_v47 = vpop.f32.mrb[1].mxu0  ;;  %v3776_v2 = vsel %vm24_vm1, -142.85715, %v2457_v1 }
 0x19e   :  { %v2625_v18 = vpop.f32.mrb[0].mxu1  ;;  %v952_v45 = vsel %vm950_vm2, %v943_v56, 0.0  ;;  %v942_v60 = vsel %vm23_vm3, %v896_v47, 0.0  ;;  %v3791_v9 = vsel %vm23_vm3, -142.85715, %v896_v47  ;;  %v3804_v4 = vsel %vm950_vm2, %v3776_v2, -inf }
 0x19f   :  { %v1972_v3 = vsel %vm24_vm1, %v2625_v18, 0.0  ;;  %v1925_v28 = vpop.f32.mrb[1].mxu1  ;;  %v3785_v51 = vsel %vm24_vm1, -142.85715, %v2625_v18  ;;  %v951_v50 = vsel %vm950_vm2, %v942_v60, 0.0  ;;  %v980_v39 = vsel %vm950_vm2, %v3791_v9, -inf }
 0x1a0   :  { %v1980_v62 = vsel %vm950_vm2, %v1972_v3, 0.0  ;;  %v1971_v53 = vsel %vm23_vm3, %v1925_v28, 0.0  ;;  %v3798_v10 = vsel %vm23_vm3, -142.85715, %v1925_v28  ;;  %v2460_v61 = vpop.f32.mrb[2].mxu0  ;;  %v953_v13 = vadd.f32 %v952_v45, %v951_v50 }
 0x1a1   :  { %v1979_v36 = vsel %vm950_vm2, %v1971_v53, 0.0  ;;  %v945_v19 = vsel %vm26_vm4, %v2460_v61, 0.0  ;;  %v908_v8 = vpop.f32.mrb[3].mxu0  ;;  %v2009_v14 = vsel %vm950_vm2, %v3785_v51, -inf  ;;  %v3815_v30 = vsel %vm26_vm4, -142.85715, %v2460_v61 }
 0x1a2   :  { %v2628_v63 = vpop.f32.mrb[2].mxu1  ;;  %v1981_v25 = vadd.f32 %v1980_v62, %v1979_v36  ;;  %v2008_v23 = vsel %vm950_vm2, %v3798_v10, -inf  ;;  %v944_v40 = vsel %vm25_vm5, %v908_v8, 0.0  ;;  %v956_v52 = vsel %vm950_vm2, %v945_v19, 0.0 }
 0x1a3   :  { %v1974_v59 = vsel %vm26_vm4, %v2628_v63, 0.0  ;;  %v1937_v0 = vpop.f32.mrb[3].mxu1  ;;  %v3825_v24 = vsel %vm26_vm4, -142.85715, %v2628_v63  ;;  %v954_v31 = vsel %vm950_vm2, %v944_v40, 0.0  ;;  %v3841_v21 = vsel %vm950_vm2, %v3815_v30, -inf }
 0x1a4   :  { %v3833_v29 = vsel %vm25_vm5, -142.85715, %v908_v8  ;;  %v1973_v46 = vsel %vm25_vm5, %v1937_v0, 0.0  ;;  %v2463_v11 = vpop.f32.mrb[4].mxu0  ;;  %v1984_v43 = vsel %vm950_vm2, %v1974_v59, 0.0  ;;  %v955_v44 = vadd.f32 %v954_v31, %v953_v13 }
 0x1a5   :  { %v1982_v15 = vsel %vm950_vm2, %v1973_v46, 0.0  ;;  %v920_v48 = vpop.f32.mrb[5].mxu0  ;;  %v3847_v6 = vsel %vm950_vm2, %v3825_v24, -inf  ;;  %v982_v49 = vsel %vm950_vm2, %v3833_v29, -inf  ;;  %v3854_v42 = vsel %vm28_vm6, -142.85715, %v2463_v11 }
 0x1a6   :  { %v2631_v32 = vpop.f32.mrb[4].mxu1  ;;  %v1983_v55 = vadd.f32 %v1982_v15, %v1981_v25  ;;  %v3858_v16 = vsel %vm25_vm5, -142.85715, %v1937_v0  ;;  %v947_v41 = vsel %vm28_vm6, %v2463_v11, 0.0  ;;  %v986_v34 = vsel %vm950_vm2, %v3854_v42, -inf }
 0x1a7   :  { %v1949_v17 = vpop.f32.mrb[5].mxu1  ;;  %v3868_v38 = vsel %vm28_vm6, -142.85715, %v2631_v32  ;;  %v987_v5 = vmax.f32 %v3804_v4, %v986_v34  ;;  %v1976_v22 = vsel %vm28_vm6, %v2631_v32, 0.0  ;;  %v946_v27 = vsel %vm27_vm7, %v920_v48, 0.0 }
 0x1a8   :  { %v2014_v12 = vsel %vm950_vm2, %v3868_v38, -inf  ;;  %v2466_v33 = vpop.f32.mrb[6].mxu0  ;;  %v957_v7 = vadd.f32 %v956_v52, %v955_v44  ;;  %v958_v20 = vsel %vm950_vm2, %v946_v27, 0.0  ;;  %v3883_v1 = vsel %vm27_vm7, -142.85715, %v920_v48 }
 0x1a9   :  { %v2015_v57 = vmax.f32 %v2009_v14, %v2014_v12  ;;  %v932_v26 = vpop.f32.mrb[7].mxu0  ;;  %v984_v18 = vsel %vm950_vm2, %v3883_v1, -inf  ;;  %v1975_v47 = vsel %vm27_vm7, %v1949_v17, 0.0  ;;  %v1985_v45 = vadd.f32 %v1984_v43, %v1983_v55 }
 0x1aa   :  { %v2634_v56 = vpop.f32.mrb[6].mxu1  ;;  %v3893_v3 = vsel %vm27_vm7, -142.85715, %v1949_v17  ;;  %v959_v62 = vadd.f32 %v958_v20, %v957_v7  ;;  %v985_v60 = vmax.f32 %v980_v39, %v984_v18  ;;  %v1986_v50 = vsel %vm950_vm2, %v1975_v47, 0.0 }
 0x1ab   :  { %v1961_v28 = vpop.f32.mrb[7].mxu1  ;;  %v2012_v53 = vsel %vm950_vm2, %v3893_v3, -inf  ;;  %v960_v61 = vsel %vm950_vm2, %v947_v41, 0.0  ;;  %v1987_v4 = vadd.f32 %v1986_v50, %v1985_v45  ;;  %v3902_v36 = vsel %vm30_vm8, -142.85715, %v2466_v33 }
 0x1ac   :  { %v2013_v13 = vmax.f32 %v2008_v23, %v2012_v53  ;;  %v1988_v35 = vsel %vm950_vm2, %v1976_v22, 0.0  ;;  %v992_v19 = vmax.f32 %v985_v60, %v987_v5  ;;  %v949_v63 = vsel %vm30_vm8, %v2466_v33, 0.0 }
 0x1ad   :  { %v990_v8 = vsel %vm950_vm2, %v3902_v36, -inf  ;;  %v1978_v59 = vsel %vm30_vm8, %v2634_v56, 0.0  ;;  %v3917_v0 = vsel %vm30_vm8, -142.85715, %v2634_v56  ;;  %v948_v23 = vsel %vm29_vm9, %v932_v26, 0.0 }
 0x1ae   :  { %v2020_v14 = vmax.f32 %v2013_v13, %v2015_v57  ;;  %v991_v25 = vmax.f32 %v3841_v21, %v990_v8  ;;  %v2018_v39 = vsel %vm950_vm2, %v3917_v0, -inf  ;;  %v961_v40 = vadd.f32 %v960_v61, %v959_v62 }
 0x1af   :  { %v978_v52 = vsel %vm29_vm9, -142.85715, %v932_v26  ;;  %v2019_v31 = vmax.f32 %v3847_v6, %v2018_v39  ;;  %v962_v46 = vsel %vm950_vm2, %v948_v23, 0.0  ;;  %v1977_v11 = vsel %vm29_vm9, %v1961_v28, 0.0 }
 0x1b0   :  { %v988_v54 = vsel %vm950_vm2, %v978_v52, -inf  ;;  %v963_v21 = vadd.f32 %v962_v46, %v961_v40  ;;  %v1989_v44 = vadd.f32 %v1988_v35, %v1987_v4  ;;  %v1990_v15 = vsel %vm950_vm2, %v1977_v11, 0.0 }
 0x1b1   :  { %v989_v43 = vmax.f32 %v982_v49, %v988_v54  ;;  %v2010_v32 = vsel %vm950_vm2, %v3858_v16, -inf  ;;  %v964_v48 = vsel %vm950_vm2, %v949_v63, 0.0  ;;  %v3940_v6 = vsel %vm29_vm9, -142.85715, %v1961_v28 }
 0x1b2   :  { %v965_v55 = vadd.f32 %v964_v48, %v963_v21  ;;  %v1991_v41 = vadd.f32 %v1990_v15, %v1989_v44  ;;  %v2016_v34 = vsel %vm950_vm2, %v3940_v6, -inf  ;;  %v1992_v49 = vsel %vm950_vm2, %v1978_v59, 0.0 }
 0x1b3   :  { %v993_v17 = vmax.f32 %v989_v43, %v991_v25  ;;  %v2017_v5 = vmax.f32 %v2010_v32, %v2016_v34 }
 0x1b4   :  { %v966_v22 = vrot.slane %v965_v55, 4  ;;  %v1993_v27 = vadd.f32 %v1992_v49, %v1991_v41 }
 0x1b5   :  { %v994_v12 = vmax.f32 %v992_v19, %v993_v17  ;;  %v2021_v33 = vmax.f32 %v2017_v5, %v2019_v31 }
 0x1b6   :  { %v967_v57 = vadd.f32 %v966_v22, %v965_v55  ;;  %v1994_v20 = vrot.slane %v1993_v27, 4 }
 0x1b7   :  { %v995_v7 = vrot.slane %v994_v12, 4  ;;  %v2022_v56 = vmax.f32 %v2020_v14, %v2021_v33 }
 0x1b8   :  { %v968_v37 = vrot.slane %v967_v57, 2  ;;  %v1995_v26 = vadd.f32 %v1994_v20, %v1993_v27 }
 0x1b9   :  { %v996_v58 = vmax.f32 %v994_v12, %v995_v7  ;;  %v2023_v18 = vrot.slane %v2022_v56, 4 }
 0x1ba   :  { %v969_v47 = vadd.f32 %v968_v37, %v967_v57  ;;  %v1996_v50 = vrot.slane %v1995_v26, 2 }
 0x1bb   :  { %v997_v45 = vrot.slane %v996_v58, 2  ;;  %v2024_v28 = vmax.f32 %v2022_v56, %v2023_v18 }
 0x1bc   :  { %v970_v60 = vrot.slane %v969_v47, 1  ;;  %v1997_v19 = vadd.f32 %v1996_v50, %v1995_v26 }
 0x1bd   :  { %v998_v62 = vmax.f32 %v996_v58, %v997_v45  ;;  %v2025_v53 = vrot.slane %v2024_v28, 2 }
 0x1be   :  { %v3947_v63 = vadd.f32 %v970_v60, %v969_v47  ;;  %v1998_v21 = vrot.slane %v1997_v19, 1 }
 0x1bf   :  { %v999_v61 = vrot.slane %v998_v62, 1  ;;  %v2026_v4 = vmax.f32 %v2024_v28, %v2025_v53 }
 0x1c0   :  { %v3986_v55 = vadd.f32 %v1998_v21, %v1997_v19 }
 0x1c1   :  { %v3945_v13 = vmax.f32 %v998_v62, %v999_v61  ;;  %v2027_v35 = vrot.slane %v2026_v4, 1 }
 0x1c3   :  { %v1001_v8 = vsub.f32 %v3791_v9, %v3945_v13  ;;  %v1002_v14 = vsub.f32 %v3776_v2, %v3945_v13  ;;  %v1003_v25 = vsub.f32 %v3833_v29, %v3945_v13  ;;  %v1004_v59 = vsub.f32 %v3815_v30, %v3945_v13 }
 0x1c4   :  { %v1005_v39 = vsub.f32 %v3883_v1, %v3945_v13  ;;  %v1006_v23 = vsub.f32 %v3854_v42, %v3945_v13  ;;  %v1007_v40 = vsub.f32 %v978_v52, %v3945_v13  ;;  %v1008_v9 = vsub.f32 %v3902_v36, %v3945_v13 }
 0x1c5   :  { %v1009_v31 = vmul.f32 1.442695, %v1001_v8  ;;  %v1011_v46 = vmul.f32 1.442695, %v1002_v14  ;;  %v1013_v2 = vmul.f32 1.442695, %v1003_v25  ;;  %v3964_v54 = vmax.f32 %v2026_v4, %v2027_v35 }
 0x1c6   :  { %v1015_v29 = vmul.f32 1.442695, %v1004_v59  ;;  %v1017_v11 = vmul.f32 1.442695, %v1005_v39  ;;  %v3968_v30 = vmax.f32 %v3945_v13, %v3947_v63  ;;  %v1019_v1 = vmul.f32 1.442695, %v1006_v23 }
 0x1c7   :  { %2909 = vpow2.f32 %v1009_v31  ;;  %v1021_v42 = vmul.f32 1.442695, %v1007_v40  ;;  %v2029_v52 = vsub.f32 %v3798_v10, %v3964_v54  ;;  %v2030_v36 = vsub.f32 %v3785_v51, %v3964_v54 }
 0x1c8   :  { %2911 = vpow2.f32 %v1011_v46  ;;  %v2031_v43 = vsub.f32 %v3858_v16, %v3964_v54  ;;  %v2032_v44 = vsub.f32 %v3825_v24, %v3964_v54  ;;  %v2033_v15 = vsub.f32 %v3893_v3, %v3964_v54 }
 0x1c9   :  { %2913 = vpow2.f32 %v1013_v2  ;;  %v2034_v32 = vsub.f32 %v3868_v38, %v3964_v54  ;;  %v2035_v10 = vsub.f32 %v3940_v6, %v3964_v54  ;;  %v1023_v48 = vmul.f32 1.442695, %v1008_v9 }
 0x1ca   :  { %2915 = vpow2.f32 %v1015_v29  ;;  %v2036_v51 = vsub.f32 %v3917_v0, %v3964_v54  ;;  %v2037_v16 = vmul.f32 1.442695, %v2029_v52  ;;  %v2039_v24 = vmul.f32 1.442695, %v2030_v36 }
 0x1cb   :  { %2917 = vpow2.f32 %v1017_v11  ;;  %v2041_v17 = vmul.f32 1.442695, %v2031_v43  ;;  %v3990_v3 = vmax.f32 %v3964_v54, %v3986_v55  ;;  %v1047_v38 = vsub.f32 %v3945_v13, %v3968_v30 }
 0x1cc   :  { %2919 = vpow2.f32 %v1019_v1  ;;  %v1051_v6 = vsub.f32 %v3947_v63, %v3968_v30  ;;  %v2043_v0 = vmul.f32 1.442695, %v2032_v44  ;;  %v2045_v49 = vmul.f32 1.442695, %v2033_v15 }
 0x1cd   :  { %2921 = vpow2.f32 %v1021_v42  ;;  %v2075_v41 = vsub.f32 %v3964_v54, %v3990_v3  ;;  %v2079_v34 = vsub.f32 %v3986_v55, %v3990_v3  ;;  %v2047_v27 = vmul.f32 1.442695, %v2034_v32 }
 0x1ce   :  { %2923 = vpow2.f32 %v1023_v48  ;;  %v2049_v56 = vmul.f32 1.442695, %v2035_v10  ;;  %v2051_v47 = vmul.f32 1.442695, %v2036_v51  ;;  %v1048_v29 = vmul.f32 1.442695, %v1047_v38 }
 0x1cf   :  { %2925 = vpow2.f32 %v2037_v16  ;;  %v1052_v52 = vmul.f32 1.442695, %v1051_v6  ;;  %v2076_v38 = vmul.f32 1.442695, %v2075_v41 }
 0x1d0   :  { %2927 = vpow2.f32 %v2039_v24 }
 0x1d1   :  { %v2910_v5 = vpop.eup %2909  ;;  %2929 = vpow2.f32 %v2041_v17 }
 0x1d2   :  { %v2912_v22 = vpop.eup %2911  ;;  %v1025_v12 = vsel %vm950_vm2, %v2910_v5, 0.0  ;;  %2931 = vpow2.f32 %v2043_v0 }
 0x1d3   :  { %v2914_v33 = vpop.eup %2913  ;;  %v1026_v57 = vsel %vm950_vm2, %v2912_v22, 0.0  ;;  %2933 = vpow2.f32 %v2045_v49  ;;  %v2080_v49 = vmul.f32 1.442695, %v2079_v34 }
 0x1d4   :  { %v2916_v7 = vpop.eup %2915  ;;  %v1027_v20 = vadd.f32 %v1026_v57, %v1025_v12  ;;  %v1028_v58 = vsel %vm950_vm2, %v2914_v33, 0.0  ;;  %2935 = vpow2.f32 %v2047_v27 }
 0x1d5   :  { %v2918_v37 = vpop.eup %2917  ;;  %v1030_v28 = vsel %vm950_vm2, %v2916_v7, 0.0  ;;  %2937 = vpow2.f32 %v2049_v56 }
 0x1d6   :  { %v2920_v26 = vpop.eup %2919  ;;  %v1029_v18 = vadd.f32 %v1028_v58, %v1027_v20  ;;  %v1032_v53 = vsel %vm950_vm2, %v2918_v37, 0.0  ;;  %2939 = vpow2.f32 %v2051_v47 }
 0x1d7   :  { %v2922_v45 = vpop.eup %2921  ;;  %v1034_v19 = vsel %vm950_vm2, %v2920_v26, 0.0  ;;  %2941 = vpow2.f32 %v1048_v29 }
 0x1d8   :  { %v2924_v62 = vpop.eup %2923  ;;  %v1031_v60 = vadd.f32 %v1030_v28, %v1029_v18  ;;  %v1036_v39 = vsel %vm950_vm2, %v2922_v45, 0.0  ;;  %2943 = vpow2.f32 %v1052_v52 }
 0x1d9   :  { %v2926_v50 = vpop.eup %2925  ;;  %v1038_v46 = vsel %vm950_vm2, %v2924_v62, 0.0  ;;  %2945 = vpow2.f32 %v2076_v38 }
 0x1da   :  { %v2928_v61 = vpop.eup %2927  ;;  %v1033_v4 = vadd.f32 %v1032_v53, %v1031_v60  ;;  %v2053_v13 = vsel %vm950_vm2, %v2926_v50, 0.0  ;;  %2947 = vpow2.f32 %v2080_v49 }
 0x1db   :  { %v2930_v35 = vpop.eup %2929  ;;  %v2054_v8 = vsel %vm950_vm2, %v2928_v61, 0.0 }
 0x1dc   :  { %v2932_v14 = vpop.eup %2931  ;;  %v1035_v25 = vadd.f32 %v1034_v19, %v1033_v4  ;;  %v2055_v59 = vadd.f32 %v2054_v8, %v2053_v13  ;;  %v2056_v23 = vsel %vm950_vm2, %v2930_v35, 0.0 }
 0x1dd   :  { %v2934_v40 = vpop.eup %2933  ;;  %v2058_v2 = vsel %vm950_vm2, %v2932_v14, 0.0 }
 0x1de   :  { %v1037_v9 = vadd.f32 %v1036_v39, %v1035_v25  ;;  %v2057_v31 = vadd.f32 %v2056_v23, %v2055_v59  ;;  %v2936_v11 = vpop.eup %2935  ;;  %v2060_v42 = vsel %vm950_vm2, %v2934_v40, 0.0 }
 0x1df   :  { %v2938_v36 = vpop.eup %2937  ;;  %v2062_v15 = vsel %vm950_vm2, %v2936_v11, 0.0 }
 0x1e0   :  { %v1039_v21 = vadd.f32 %v1038_v46, %v1037_v9  ;;  %v2059_v1 = vadd.f32 %v2058_v2, %v2057_v31  ;;  %v2940_v32 = vpop.eup %2939  ;;  %v2064_v51 = vsel %vm950_vm2, %v2938_v36, 0.0 }
 0x1e1   :  { %v2066_v17 = vsel %vm950_vm2, %v2940_v32, 0.0  ;;  %v2942_v33 = vpop.eup %2941 }
 0x1e2   :  { %v1040_v43 = vrot.slane %v1039_v21, 4  ;;  %v2061_v44 = vadd.f32 %v2060_v42, %v2059_v1  ;;  %v2944_v20 = vpop.eup %2943 }
 0x1e3   :  { %v2946_v58 = vpop.eup %2945 }
 0x1e4   :  { %v1041_v10 = vadd.f32 %v1040_v43, %v1039_v21  ;;  %v2063_v48 = vadd.f32 %v2062_v15, %v2061_v44  ;;  %v2948_v18 = vpop.eup %2947 }
 0x1e6   :  { %v1042_v16 = vrot.slane %v1041_v10, 2  ;;  %v2065_v24 = vadd.f32 %v2064_v51, %v2063_v48 }
 0x1e8   :  { %v2067_v6 = vadd.f32 %v2066_v17, %v2065_v24  ;;  %v1043_v0 = vadd.f32 %v1042_v16, %v1041_v10 }
 0x1ea   :  { %v2068_v5 = vrot.slane %v2067_v6, 4  ;;  %v1044_v22 = vrot.slane %v1043_v0, 1 }
 0x1ec   :  { %v2069_v12 = vadd.f32 %v2068_v5, %v2067_v6  ;;  %v1045_v27 = vadd.f32 %v1044_v22, %v1043_v0 }
 0x1ee   :  { %v2070_v57 = vrot.slane %v2069_v12, 2  ;;  %v1050_v7 = vmul.f32 %v2942_v33, %v1045_v27 }
 0x1f0   :  { %v2071_v56 = vadd.f32 %v2070_v57, %v2069_v12  ;;  %v1054_v37 = vadd.f32 %v2944_v20, %v1050_v7 }
 0x1f2   :  { %v2072_v54 = vrot.slane %v2071_v56, 1  ;;  %2949 = vlog2.f32 %v1054_v37 }
 0x1f4   :  { %v2073_v41 = vadd.f32 %v2072_v54, %v2071_v56 }
 0x1f6   :  { %v2078_v26 = vmul.f32 %v2946_v58, %v2073_v41 }
 0x1f8   :  { %v2082_v47 = vadd.f32 %v2948_v18, %v2078_v26 }
 0x1fa   :  { %2951 = vlog2.f32 %v2082_v47 }
 0x1fc   :  { %v2950_v34 = vpop.eup %2949 }
 0x1fd   :  { %v1056_v45 = vmul.f32 0.6931472, %v2950_v34 }
 0x1ff   :  { %v1057_v28 = vadd.f32 %v1056_v45, %v3968_v30 }
 0x201   :  { %v1058_v62 = vsub.f32 %v1057_v28, %v3947_v63 }
 0x203   :  { %1060 = vst.msk [vmem:[#allocation2] sm:$0x1] %vm1059_vm10, %v1058_v62 }
 0x204   :  { %v2952_v60 = vpop.eup %2951 }
 0x205   :  { %v2084_v50 = vmul.f32 0.6931472, %v2952_v60 }
 0x207   :  { %v2085_v53 = vadd.f32 %v2084_v50, %v3990_v3 }
 0x209   :  { %v2086_v61 = vsub.f32 %v2085_v53, %v3986_v55 }
 0x20b   :  { %2088 = vrot.lane.b32.xlu0 %v2086_v61, %s2977_s1 }
 0x27d   :  { %v2089_v4 = vpop.permute.xlu0 %2088 }
 0x27e   :  { %2092 = vst.msk [vmem:[#allocation2] sm:$0x1] %vm2091_vm11, %v2089_v4 }
 0x27f   :  { %2964 = shalt.err (!%p2961_p4)
}
 0x280   :  { %s2965_s21 = scalar_lea.hbm %s4040_s2, 16 }
 0x281   :  { %p2966_p5 = scmp.ne.s32.totalorder %s4040_s2, %s2965_s21  ;;  %p2969_p6 = scmp.lt.u32.totalorder %s2965_s21, %s4040_s2 }
 0x283   :  { %p2971_p7 = pnand %p2969_p6, %p2966_p5 }
 0x285   :  { %2974 = shalt.err (!%p2971_p7)
}
 0x286   :  { %2102 = dma.vmem_to_hbm [thread:$0]  %s2100_s16, 16, %s4040_s2, [#allocation3]  }
 0x287   :  { %2975 = dma.done.wait [#allocation3], 16  }
 0x288   :  { %2976 = vsyncadd [#allocation3], 4294967280 }
 0x289   :  { %2106 = vsyncpa [#allocation3], 1 }

</bundles_post_ra>
